<compile_context>
chip_gen: v7x
topology: tpu7x:2x2x1
jax: 0.10.0
libtpu: 0.0.40
codegen_flags: <defaults>
</compile_context>

<pallas_src>
import functools

import jax
import jax.numpy as jnp
from jax.experimental import pallas as pl
from jax.experimental.pallas import tpu as pltpu

_LANE = 128
_ACT_VMEM_BUDGET = 24 * 1024 * 1024   # target for 2 input + 2 output activation buffers
_VMEM_LIMIT = 32 * 1024 * 1024        # scoped VMEM limit (safe on v5e/v6e/v7x)


def _cdiv(a, b):
    return -(-a // b)


def _round_up(a, b):
    return _cdiv(a, b) * b


# ----------------------------------------------------------------------------
# Kernels
# ----------------------------------------------------------------------------

def _se_mlp(pooled_f32, w1t_ref, w2_ref):
    """Squeeze-excite MLP on the VPU (no MXU matvecs).

    pooled_f32: (C, 1) f32
    w1t_ref   : (C, Cr)  == W1.T   (W1 is the PyTorch (Cr, C) Linear weight)
    w2_ref    : (C, Cr)  == W2     (PyTorch (C, Cr) Linear weight)
    returns   : (C, 1) f32 sigmoid scale
    """
    # y1[j] = sum_c W1[j, c] * pooled[c]   -> broadcast over lanes, sublane-reduce
    y1 = jnp.sum(w1t_ref[...] * pooled_f32, axis=0, keepdims=True)      # (1, Cr)
    y1 = jnp.maximum(y1, 0.0)                                           # ReLU
    # y2[c] = sum_j W2[c, j] * y1[j]       -> broadcast over sublanes, lane-reduce
    y2 = jnp.sum(w2_ref[...] * y1, axis=1, keepdims=True)               # (C, 1)
    return jax.nn.sigmoid(y2)                                           # (C, 1)


def _se_fused_kernel(x_ref, w1t_ref, w2_ref, o_ref, *, inv_p):
    """One batch element per grid step; whole (C, P_pad) block resident."""
    x = x_ref[0]                                                        # (C, P_pad)
    # Mean over the TRUE spatial size; padded lanes are zero so they don't bias it.
    pooled = jnp.sum(x.astype(jnp.float32), axis=1, keepdims=True) * inv_p
    scale = _se_mlp(pooled, w1t_ref, w2_ref)                            # (C, 1) f32
    o_ref[0] = (x * scale).astype(o_ref.dtype)


def _se_pool_mlp_kernel(x_ref, w1t_ref, w2_ref, scale_ref, acc_ref, *, inv_p):
    """Tiled phase 0: accumulate channel sums; run MLP on the last tile."""
    t = pl.program_id(1)

    @pl.when(t == 0)
    def _():
        acc_ref[...] = jnp.zeros_like(acc_ref)

    x = x_ref[0]                                                        # (C, TP)
    acc_ref[...] += jnp.sum(x.astype(jnp.float32), axis=1, keepdims=True)

    @pl.when(t == pl.num_programs(1) - 1)
    def _():
        pooled = acc_ref[...] * inv_p                                   # (C, 1) f32
        scale_ref[0] = _se_mlp(pooled, w1t_ref, w2_ref)                 # (C, 1) f32


def _se_rescale_kernel(x_ref, scale_ref, o_ref):
    """Tiled phase 1: elementwise per-channel rescale of a (C, TP) tile."""
    o_ref[0] = (x_ref[0] * scale_ref[0]).astype(o_ref.dtype)


# ----------------------------------------------------------------------------
# Wrapper
# ----------------------------------------------------------------------------

def senet_channel_attention(x_nchw, w1, w2, *,
                            act_vmem_budget_bytes=_ACT_VMEM_BUDGET):
    """SE channel attention.

    x_nchw: (B, C, H, W)  (f32 or bf16; dtype preserved)
    w1    : (C // r, C)   nn.Linear(C, C//r, bias=False).weight
    w2    : (C, C // r)   nn.Linear(C//r, C, bias=False).weight
    """
    B, C, H, W = x_nchw.shape
    Cr = w1.shape[0]
    assert w1.shape == (Cr, C) and w2.shape == (C, Cr), (w1.shape, w2.shape)

    dtype = x_nchw.dtype
    # Budget tiles as if f32 so the in-kernel f32 temporaries always have headroom.
    eff_itemsize = max(jnp.dtype(dtype).itemsize, 4)

    # Weights are tiny; keep them f32 and VMEM-resident.  W1 is passed transposed
    # so both FC layers are VPU broadcast-mult + XLU reduce (no N=1 MXU matvec).
    w1t = jnp.asarray(w1, jnp.float32).T          # (C, Cr)
    w2f = jnp.asarray(w2, jnp.float32)            # (C, Cr)

    # --- lane-tile sizing -----------------------------------------------------
    P = H * W
    p128 = _round_up(P, _LANE)
    # Largest lane tile (multiple of 128) such that 2 in + 2 out buffers fit.
    tp_max = max(_LANE, (act_vmem_budget_bytes // (4 * C * eff_itemsize)) // _LANE * _LANE)
    n_tiles = _cdiv(p128, tp_max)
    tp = _round_up(_cdiv(p128, n_tiles), _LANE)   # balanced tiles, minimal padding
    p_pad = n_tiles * tp

    xf = x_nchw.reshape(B, C, P)                  # free metadata reshape (NCHW contiguous)
    if p_pad != P:
        # Zero padding: contributes 0 to the pooled sum (we divide by the true P)
        # and padded output lanes are cropped below.
        xf = jnp.pad(xf, ((0, 0), (0, 0), (0, p_pad - P)))

    inv_p = 1.0 / float(P)
    cparams = dict(vmem_limit_bytes=_VMEM_LIMIT)

    if n_tiles == 1:
        # ---------------- fused single-pass path (x read once) ----------------
        out = pl.pallas_call(
            functools.partial(_se_fused_kernel, inv_p=inv_p),
            out_shape=jax.ShapeDtypeStruct((B, C, p_pad), dtype),
            grid_spec=pltpu.PrefetchScalarGridSpec(
                num_scalar_prefetch=0,
                grid=(B,),
                in_specs=[
                    pl.BlockSpec((1, C, p_pad), lambda b: (b, 0, 0)),   # activations
                    pl.BlockSpec((C, Cr), lambda b: (0, 0)),            # W1^T (resident)
                    pl.BlockSpec((C, Cr), lambda b: (0, 0)),            # W2   (resident)
                ],
                out_specs=pl.BlockSpec((1, C, p_pad), lambda b: (b, 0, 0)),
            ),
            compiler_params=pltpu.CompilerParams(
                dimension_semantics=("parallel",), **cparams),
        )(xf, w1t, w2f)
    else:
        # ---------------- tiled two-call path (large feature maps) ------------
        # Call 1: streamed pool + MLP -> per-(b, c) sigmoid scale.
        scales = pl.pallas_call(
            functools.partial(_se_pool_mlp_kernel, inv_p=inv_p),
            out_shape=jax.ShapeDtypeStruct((B, C, 1), jnp.float32),
            grid_spec=pltpu.PrefetchScalarGridSpec(
                num_scalar_prefetch=0,
                grid=(B, n_tiles),
                in_specs=[
                    pl.BlockSpec((1, C, tp), lambda b, t: (b, 0, t)),
                    pl.BlockSpec((C, Cr), lambda b, t: (0, 0)),
                    pl.BlockSpec((C, Cr), lambda b, t: (0, 0)),
                ],
                out_specs=pl.BlockSpec((1, C, 1), lambda b, t: (b, 0, 0)),
                scratch_shapes=[pltpu.VMEM((C, 1), jnp.float32)],
            ),
            compiler_params=pltpu.CompilerParams(
                dimension_semantics=("parallel", "arbitrary"), **cparams),
        )(xf, w1t, w2f)

        # Call 2: tiled elementwise rescale; both axes parallel so v7x's two
        # TensorCores split the bandwidth-bound work even at B == 1.
        out = pl.pallas_call(
            _se_rescale_kernel,
            out_shape=jax.ShapeDtypeStruct((B, C, p_pad), dtype),
            grid_spec=pltpu.PrefetchScalarGridSpec(
                num_scalar_prefetch=0,
                grid=(B, n_tiles),
                in_specs=[
                    pl.BlockSpec((1, C, tp), lambda b, t: (b, 0, t)),
                    pl.BlockSpec((1, C, 1), lambda b, t: (b, 0, 0)),
                ],
                out_specs=pl.BlockSpec((1, C, tp), lambda b, t: (b, 0, t)),
            ),
            compiler_params=pltpu.CompilerParams(
                dimension_semantics=("parallel", "parallel"), **cparams),
        )(xf, scales)

    if p_pad != P:
        out = out[:, :, :P]
    return out.reshape(B, C, H, W)


# ----------------------------------------------------------------------------
# Parameter init (nn.Linear-default-ish scaling; values are arbitrary)
# ----------------------------------------------------------------------------

def init_params(key, num_channels, reduction_ratio=16):
    c_red = num_channels // reduction_ratio
    k1, k2 = jax.random.split(key)
    bound1 = 1.0 / jnp.sqrt(num_channels)
    bound2 = 1.0 / jnp.sqrt(c_red)
    w1 = jax.random.uniform(k1, (c_red, num_channels), jnp.float32,
                            minval=-bound1, maxval=bound1)
    w2 = jax.random.uniform(k2, (num_channels, c_red), jnp.float32,
                            minval=-bound2, maxval=bound2)
    return w1, w2


# ----------------------------------------------------------------------------
# Pure-JAX reference
# ----------------------------------------------------------------------------

def senet_channel_attention_reference(x_nchw, w1, w2):
    pooled = jnp.mean(x_nchw.astype(jnp.float32), axis=(2, 3))      # (B, C)
    y = jnp.maximum(pooled @ w1.T, 0.0)                             # (B, Cr)
    y = jax.nn.sigmoid(y @ w2.T)                                    # (B, C)
    return (x_nchw * y[:, :, None, None].astype(x_nchw.dtype)).astype(x_nchw.dtype)


if __name__ == "__main__":
    key = jax.random.PRNGKey(0)
    pkey, xkey = jax.random.split(key)

    # reduction_ratio=16 needs C >= 16; batch=2, channels=64 (-> Cr=4), spatial=16.
    B, C, H, W = 2, 64, 16, 16
    w1, w2 = init_params(pkey, C, reduction_ratio=16)
    x = jax.random.normal(xkey, (B, C, H, W), jnp.float32)
    ref = senet_channel_attention_reference(x, w1, w2)

    # 1) Fused single-pass path (whole (C, H*W) block fits the VMEM budget).
    out = jax.block_until_ready(jax.jit(senet_channel_attention)(x, w1, w2))
    assert out.shape == (B, C, H, W), out.shape
    assert jnp.allclose(out, ref, rtol=1e-2, atol=1e-2), \
        float(jnp.max(jnp.abs(out - ref)))

    # 2) Force the tiled two-call path (tiny budget -> 128-lane tiles, 2 tiles).
    tiled_fn = jax.jit(functools.partial(senet_channel_attention,
                                         act_vmem_budget_bytes=128 * 1024))
    out_t = jax.block_until_ready(tiled_fn(x, w1, w2))
    assert jnp.allclose(out_t, ref, rtol=1e-2, atol=1e-2), \
        float(jnp.max(jnp.abs(out_t - ref)))

    # 3) Non-128-multiple spatial size exercises the zero-pad / crop path.
    x_odd = jax.random.normal(xkey, (B, C, 10, 10), jnp.float32)
    ref_odd = senet_channel_attention_reference(x_odd, w1, w2)
    out_odd = jax.block_until_ready(jax.jit(senet_channel_attention)(x_odd, w1, w2))
    assert jnp.allclose(out_odd, ref_odd, rtol=1e-2, atol=1e-2), \
        float(jnp.max(jnp.abs(out_odd - ref_odd)))

    print("KERNEL_OK")
</pallas_src>

<mosaic_0001>
module attributes {stable_mosaic.version = 11 : i64} {
  func.func @_se_fused_kernel(%arg0: i32, %arg1: memref<1x64x256xf32, #tpu.memory_space<vmem>>, %arg2: memref<64x4xf32, #tpu.memory_space<vmem>>, %arg3: memref<64x4xf32, #tpu.memory_space<vmem>>, %arg4: memref<1x64x256xf32, #tpu.memory_space<vmem>>) attributes {dimension_semantics = [#tpu.dimension_semantics<parallel>], iteration_bounds = array<i64: 2>, scalar_prefetch = 0 : i64, scratch_operands = 0 : i64, tpu.core_type = #tpu.core_type<tc>, window_params = [{transform_indices = @transform_0, window_bounds = array<i64: 1, 64, 256>}, {pipeline_mode = #tpu.pipeline_mode<synchronous>, transform_indices = @transform_1, window_bounds = array<i64: 64, 4>}, {pipeline_mode = #tpu.pipeline_mode<synchronous>, transform_indices = @transform_2, window_bounds = array<i64: 64, 4>}, {transform_indices = @transform_3, window_bounds = array<i64: 1, 64, 256>}]} {
    %c0 = arith.constant 0 : index
    %c0_0 = arith.constant 0 : index
    %c0_1 = arith.constant 0 : index
    %0 = vector.load %arg1[%c0, %c0_0, %c0_1] : memref<1x64x256xf32, #tpu.memory_space<vmem>>, vector<1x64x256xf32>
    %1 = vector.shape_cast %0 : vector<1x64x256xf32> to vector<64x256xf32>
    %cst = arith.constant dense<0.000000e+00> : vector<64xf32>
    %2 = vector.multi_reduction <add>, %1, %cst [1] : vector<64x256xf32> to vector<64xf32>
    %3 = vector.shape_cast %2 : vector<64xf32> to vector<64x1xf32>
    %cst_2 = arith.constant 3.906250e-03 : f32
    %4 = vector.broadcast %cst_2 : f32 to vector<64x1xf32>
    %5 = arith.mulf %3, %4 : vector<64x1xf32>
    %c0_3 = arith.constant 0 : index
    %c0_4 = arith.constant 0 : index
    %6 = vector.load %arg2[%c0_3, %c0_4] : memref<64x4xf32, #tpu.memory_space<vmem>>, vector<64x4xf32>
    %7 = vector.broadcast %5 : vector<64x1xf32> to vector<64x4xf32>
    %8 = arith.mulf %6, %7 : vector<64x4xf32>
    %cst_5 = arith.constant dense<0.000000e+00> : vector<4xf32>
    %9 = vector.multi_reduction <add>, %8, %cst_5 [0] : vector<64x4xf32> to vector<4xf32>
    %10 = vector.shape_cast %9 : vector<4xf32> to vector<1x4xf32>
    %cst_6 = arith.constant 0.000000e+00 : f32
    %11 = vector.broadcast %cst_6 : f32 to vector<1x4xf32>
    %12 = arith.maximumf %10, %11 : vector<1x4xf32>
    %c0_7 = arith.constant 0 : index
    %c0_8 = arith.constant 0 : index
    %13 = vector.load %arg3[%c0_7, %c0_8] : memref<64x4xf32, #tpu.memory_space<vmem>>, vector<64x4xf32>
    %14 = vector.broadcast %12 : vector<1x4xf32> to vector<64x4xf32>
    %15 = arith.mulf %13, %14 : vector<64x4xf32>
    %cst_9 = arith.constant dense<0.000000e+00> : vector<64xf32>
    %16 = vector.multi_reduction <add>, %15, %cst_9 [1] : vector<64x4xf32> to vector<64xf32>
    %17 = vector.shape_cast %16 : vector<64xf32> to vector<64x1xf32>
    %18 = arith.negf %17 : vector<64x1xf32>
    %19 = math.exp %18 : vector<64x1xf32>
    %cst_10 = arith.constant 1.000000e+00 : f32
    %20 = vector.broadcast %cst_10 : f32 to vector<64x1xf32>
    %21 = arith.addf %20, %19 : vector<64x1xf32>
    %22 = arith.divf %20, %21 : vector<64x1xf32>
    %23 = vector.broadcast %22 : vector<64x1xf32> to vector<64x256xf32>
    %24 = arith.mulf %1, %23 : vector<64x256xf32>
    %c0_11 = arith.constant 0 : index
    %c0_12 = arith.constant 0 : index
    %c0_13 = arith.constant 0 : index
    %25 = vector.load %arg4[%c0_11, %c0_12, %c0_13] : memref<1x64x256xf32, #tpu.memory_space<vmem>>, vector<1x64x256xf32>
    %26 = vector.shape_cast %25 : vector<1x64x256xf32> to vector<64x256xf32>
    %27 = vector.shape_cast %24 : vector<64x256xf32> to vector<1x64x256xf32>
    tpu.vector_store %arg4[%c0_11, %c0_12, %c0_13], %27 {strides = array<i32>} : memref<1x64x256xf32, #tpu.memory_space<vmem>>, vector<1x64x256xf32>,
    return
  }
  func.func @transform_0(%arg0: i32) -> (i32, i32, i32) {
    %c0_i32 = arith.constant 0 : i32
    %c0_i32_0 = arith.constant 0 : i32
    %c0_i32_1 = arith.constant 0 : i32
    return %arg0, %c0_i32, %c0_i32_0 : i32, i32, i32
  }
  func.func @transform_1(%arg0: i32) -> (i32, i32) {
    %c0_i32 = arith.constant 0 : i32
    %c0_i32_0 = arith.constant 0 : i32
    %c0_i32_1 = arith.constant 0 : i32
    return %c0_i32, %c0_i32_0 : i32, i32
  }
  func.func @transform_2(%arg0: i32) -> (i32, i32) {
    %c0_i32 = arith.constant 0 : i32
    %c0_i32_0 = arith.constant 0 : i32
    %c0_i32_1 = arith.constant 0 : i32
    return %c0_i32, %c0_i32_0 : i32, i32
  }
  func.func @transform_3(%arg0: i32) -> (i32, i32, i32) {
    %c0_i32 = arith.constant 0 : i32
    %c0_i32_0 = arith.constant 0 : i32
    %c0_i32_1 = arith.constant 0 : i32
    return %arg0, %c0_i32, %c0_i32_0 : i32, i32, i32
  }
}

</mosaic_0001>

<bundles_post_ra>
// kernel: senet_channel_attention.1
= control target key start
LH: loop header
LB: loop body
LE: loop exit
PB: predicated region body
PF: predicated region fallthrough
CT: control target
= control target key end

     0   :  { %s522_s12 = smov 0   ;;  %s692_s0 = inlined_call_operand.vmem [shape: f32[2,64,256], index: 0, kind: input, shape index: {}]   ;;  %s693_s1 = inlined_call_operand.vmem [shape: f32[64,4], index: 1, kind: input, shape index: {}]   ;;  %s694_s2 = inlined_call_operand.vmem [shape: f32[64,4], index: 2, kind: input, shape index: {}]   ;;  %s695_s3 = inlined_call_operand.vmem [shape: f32[2,64,256], index: 3, kind: output, shape index: {}]  }
   0x1 LB: > { %s433_s13 = sadd.s32 4294967295, %s500_s12   ;;  %p437_p0 = scmp.ge.s32.totalorder %s500_s12, 1  ;;  %s500_s12 = sphi %s522_s12, %s13_s12  }
   0x2   : > { %p137_p1 = scmp.lt.s32.totalorder %s500_s12, 3 }
   0x4   : > { %p138_p2 = pnand %p437_p0, %p137_p1 }
   0x5   : > { %p161_p3 = scmp.lt.s32.totalorder (!%p138_p2), %s433_s13, 1  ;;  %v219_v27 = vld [vmem:[%s693_s1] sm:$0xff] (!%p138_p2)  ;;  %v221_v29 = vld [vmem:[%s693_s1 + $0x10] sm:$0xff] (!%p138_p2)  ;;  %v220_v30 = vld [vmem:[%s693_s1 + $0x8] sm:$0xff] (!%p138_p2)  ;;  %vm235_vm0 = vcmask (!%p138_p2), 31744  }
   0x6   : > { %141 = sbr.rel (%p138_p2) target bundleno = 387 (0x183), region = 32  ;;  %v222_v34 = vld [vmem:[%s693_s1 + $0x18] sm:$0xff] (!%p138_p2)  ;;  %v223_v40 = vld [vmem:[%s693_s1 + $0x20] sm:$0xff] (!%p138_p2)  ;;  %v224_v45 = vld [vmem:[%s693_s1 + $0x28] sm:$0xff] (!%p138_p2) }
   0x7   : > { %v225_v54 = vld [vmem:[%s693_s1 + $0x30] sm:$0xff] (!%p138_p2)  ;;  %v226_v58 = vld [vmem:[%s693_s1 + $0x38] sm:$0xff] (!%p138_p2) }
   0xd   : > { %s697_s13 = smov (!%p161_p3, %s433_s13), 1 }
   0xe   : > { %s452_s14 = sshll.u32 %s697_s13, 7 }
   0xf   : > { %s165_s17 = scalar_lea.vmem %s692_s0, %s452_s14  ;;  %s655_s28 = scalar_lea.vmem %s695_s3, %s452_s14 }
  0x10   : > { %v538_v0 = vld [vmem:[%s165_s17] sm:$0xff]  ;;  %v540_v1 = vld [vmem:[%s165_s17 + $0x8] sm:$0xff]  ;;  %v548_v5 = vld [vmem:[%s165_s17 + $0x10] sm:$0xff] }
  0x11   : > { %v542_v2 = vld [vmem:[%s165_s17 + $0x20] sm:$0xff]  ;;  %v187_v3 = vadd.f32 %v540_v1, %v538_v0  ;;  %v546_v4 = vld [vmem:[%s165_s17 + $0x28] sm:$0xff]  ;;  %v550_v6 = vld [vmem:[%s165_s17 + $0x18] sm:$0xff] }
  0x12   : > { %v193_v7 = vadd.f32 %v546_v4, %v542_v2  ;;  %v554_v8 = vld [vmem:[%s165_s17 + $0x30] sm:$0xff]  ;;  %v556_v9 = vld [vmem:[%s165_s17 + $0x38] sm:$0xff]  ;;  %v190_v10 = vadd.f32 %v550_v6, %v548_v5  ;;  %v562_v12 = vld [vmem:[%s165_s17 + $0x40] sm:$0xff] }
  0x13   : > { %188 = vadd.xlane.f32.xlu0 %v187_v3  ;;  %v196_v11 = vadd.f32 %v556_v9, %v554_v8  ;;  %v564_v13 = vld [vmem:[%s165_s17 + $0x48] sm:$0xff]  ;;  %v566_v14 = vld [vmem:[%s165_s17 + $0x50] sm:$0xff]  ;;  %v568_v15 = vld [vmem:[%s165_s17 + $0x58] sm:$0xff] }
  0x14   : > { %194 = vadd.xlane.f32.xlu1 %v193_v7  ;;  %v199_v16 = vadd.f32 %v564_v13, %v562_v12  ;;  %v202_v17 = vadd.f32 %v568_v15, %v566_v14  ;;  %v574_v18 = vld [vmem:[%s165_s17 + $0x60] sm:$0xff]  ;;  %v576_v19 = vld [vmem:[%s165_s17 + $0x68] sm:$0xff]  ;;  %v578_v20 = vld [vmem:[%s165_s17 + $0x70] sm:$0xff] }
  0x15   : > { %v580_v21 = vld [vmem:[%s165_s17 + $0x78] sm:$0xff]  ;;  %v205_v22 = vadd.f32 %v576_v19, %v574_v18 }
  0x16   : > { %v208_v23 = vadd.f32 %v580_v21, %v578_v20 }
  0x17   : > { %191 = vadd.xlane.f32.xlu0 %v190_v10 }
  0x18   : > { %197 = vadd.xlane.f32.xlu1 %v196_v11 }
  0x1b   : > { %200 = vadd.xlane.f32.xlu0 %v199_v16 }
  0x1c   : > { %203 = vadd.xlane.f32.xlu1 %v202_v17 }
  0x1f   : > { %206 = vadd.xlane.f32.xlu0 %v205_v22 }
  0x20   : > { %209 = vadd.xlane.f32.xlu1 %v208_v23 }
  0xa0   : > { %v189_v24 = vpop.xlane.xlu0 %188 }
  0xa1   : > { %v211_v25 = vmul.f32 0.00390625, %v189_v24  ;;  %v195_v26 = vpop.xlane.xlu1 %194 }
  0xa2   : > { %v213_v28 = vmul.f32 0.00390625, %v195_v26 }
  0xa3   : > { %v227_v32 = vmul.f32 %v219_v27, %v211_v25 }
  0xa4   : > { %v192_v31 = vpop.xlane.xlu0 %191  ;;  %v229_v37 = vmul.f32 %v221_v29, %v213_v28  ;;  %v259_v29 = vld [vmem:[%s694_s2 + $0x8] sm:$0xff] }
  0xa5   : > { %v212_v33 = vmul.f32 0.00390625, %v192_v31  ;;  %v198_v35 = vpop.xlane.xlu1 %197  ;;  %v236_v42 = vsel %vm235_vm0, %v227_v32, 0.0  ;;  %v261_v32 = vld [vmem:[%s694_s2 + $0x18] sm:$0xff] }
  0xa6   : > { %v214_v36 = vmul.f32 0.00390625, %v198_v35  ;;  %v239_v49 = vsel %vm235_vm0, %v229_v37, 0.0 }
  0xa7   : > { %v228_v38 = vmul.f32 %v220_v30, %v212_v33  ;;  %v258_v30 = vld [vmem:[%s694_s2] sm:$0xff]  ;;  %v260_v33 = vld [vmem:[%s694_s2 + $0x10] sm:$0xff] }
  0xa8   : > { %v230_v39 = vmul.f32 %v222_v34, %v214_v36  ;;  %v201_v41 = vpop.xlane.xlu0 %200 }
  0xa9   : > { %v237_v43 = vsel %vm235_vm0, %v228_v38, 0.0  ;;  %v215_v44 = vmul.f32 0.00390625, %v201_v41  ;;  %v204_v46 = vpop.xlane.xlu1 %203  ;;  %v262_v41 = vld [vmem:[%s694_s2 + $0x20] sm:$0xff] }
  0xaa   : > { %v238_v47 = vadd.f32 %v237_v43, %v236_v42  ;;  %v216_v48 = vmul.f32 0.00390625, %v204_v46  ;;  %v241_v50 = vsel %vm235_vm0, %v230_v39, 0.0  ;;  %v265_v46 = vld [vmem:[%s694_s2 + $0x38] sm:$0xff] }
  0xab   : > { %v231_v51 = vmul.f32 %v223_v40, %v215_v44  ;;  %v263_v40 = vld [vmem:[%s694_s2 + $0x28] sm:$0xff] }
  0xac   : > { %v240_v52 = vadd.f32 %v239_v49, %v238_v47  ;;  %v232_v53 = vmul.f32 %v224_v45, %v216_v48  ;;  %v207_v55 = vpop.xlane.xlu0 %206  ;;  %v264_v47 = vld [vmem:[%s694_s2 + $0x30] sm:$0xff] }
  0xad   : > { %v243_v56 = vsel %vm235_vm0, %v231_v51, 0.0  ;;  %v217_v57 = vmul.f32 0.00390625, %v207_v55  ;;  %v210_v59 = vpop.xlane.xlu1 %209 }
  0xae   : > { %v242_v60 = vadd.f32 %v241_v50, %v240_v52  ;;  %v218_v61 = vmul.f32 0.00390625, %v210_v59  ;;  %v245_v62 = vsel %vm235_vm0, %v232_v53, 0.0 }
  0xaf   : > { %v233_v63 = vmul.f32 %v225_v54, %v217_v57 }
  0xb0   : > { %v244_v3 = vadd.f32 %v243_v56, %v242_v60  ;;  %v234_v7 = vmul.f32 %v226_v58, %v218_v61 }
  0xb1   : > { %v247_v10 = vsel %vm235_vm0, %v233_v63, 0.0 }
  0xb2   : > { %v246_v11 = vadd.f32 %v245_v62, %v244_v3  ;;  %v249_v16 = vsel %vm235_vm0, %v234_v7, 0.0 }
  0xb4   : > { %v248_v17 = vadd.f32 %v247_v10, %v246_v11 }
  0xb6   : > { %v250_v22 = vadd.f32 %v249_v16, %v248_v17 }
  0xb8   : > { %v251_v23 = vrot.slane %v250_v22, 4 }
  0xba   : > { %v252_v24 = vadd.f32 %v251_v23, %v250_v22 }
  0xbc   : > { %v253_v25 = vrot.slane %v252_v24, 2 }
  0xbe   : > { %v254_v26 = vadd.f32 %v253_v25, %v252_v24 }
  0xc0   : > { %v255_v27 = vrot.slane %v254_v26, 1 }
  0xc2   : > { %v256_v28 = vadd.f32 %v255_v27, %v254_v26 }
  0xc4   : > { %v257_v31 = vmax.f32 %v256_v28, 0.0 }
  0xc6   : > { %v267_v34 = vmul.f32 %v259_v29, %v257_v31  ;;  %v266_v35 = vmul.f32 %v258_v30, %v257_v31  ;;  %v269_v38 = vmul.f32 %v261_v32, %v257_v31  ;;  %v268_v39 = vmul.f32 %v260_v33, %v257_v31 }
  0xc7   : > { %v271_v44 = vmul.f32 %v263_v40, %v257_v31  ;;  %v270_v45 = vmul.f32 %v262_v41, %v257_v31  ;;  %v273_v50 = vmul.f32 %v265_v46, %v257_v31  ;;  %v272_v51 = vmul.f32 %v264_v47, %v257_v31 }
  0xc8   : > { %v277_v36 = vsel %vm235_vm0, %v267_v34, 0.0  ;;  %v274_v37 = vsel %vm235_vm0, %v266_v35, 0.0  ;;  %v283_v42 = vsel %vm235_vm0, %v269_v38, 0.0  ;;  %v280_v43 = vsel %vm235_vm0, %v268_v39, 0.0 }
  0xc9   : > { %278 = vadd.xlane.f32.xlu1 %v277_v36  ;;  %275 = vadd.xlane.f32.xlu0 %v274_v37  ;;  %v289_v48 = vsel %vm235_vm0, %v271_v44, 0.0  ;;  %v286_v49 = vsel %vm235_vm0, %v270_v45, 0.0  ;;  %v295_v52 = vsel %vm235_vm0, %v273_v50, 0.0  ;;  %v292_v53 = vsel %vm235_vm0, %v272_v51, 0.0 }
  0xcd   : > { %284 = vadd.xlane.f32.xlu1 %v283_v42  ;;  %281 = vadd.xlane.f32.xlu0 %v280_v43 }
  0xd1   : > { %290 = vadd.xlane.f32.xlu1 %v289_v48  ;;  %287 = vadd.xlane.f32.xlu0 %v286_v49 }
  0xd5   : > { %296 = vadd.xlane.f32.xlu1 %v295_v52  ;;  %293 = vadd.xlane.f32.xlu0 %v292_v53 }
 0x156   : > { %v279_v54 = vpop.xlane.xlu1 %278  ;;  %v276_v55 = vpop.xlane.xlu0 %275 }
 0x157   : > { %v443_v56 = vmul.f32 -1.442695, %v279_v54  ;;  %v442_v57 = vmul.f32 -1.442695, %v276_v55 }
 0x159   : > { %462 = vpow2.f32 %v443_v56 }
 0x15a   : > { %464 = vpow2.f32 %v442_v57  ;;  %v285_v58 = vpop.xlane.xlu1 %284  ;;  %v282_v59 = vpop.xlane.xlu0 %281 }
 0x15b   : > { %v445_v60 = vmul.f32 -1.442695, %v285_v58  ;;  %v444_v61 = vmul.f32 -1.442695, %v282_v59 }
 0x15d   : > { %466 = vpow2.f32 %v445_v60 }
 0x15e   : > { %468 = vpow2.f32 %v444_v61  ;;  %v291_v62 = vpop.xlane.xlu1 %290  ;;  %v288_v63 = vpop.xlane.xlu0 %287 }
 0x15f   : > { %v447_v3 = vmul.f32 -1.442695, %v291_v62  ;;  %v446_v7 = vmul.f32 -1.442695, %v288_v63 }
 0x161   : > { %470 = vpow2.f32 %v447_v3 }
 0x162   : > { %472 = vpow2.f32 %v446_v7  ;;  %v297_v10 = vpop.xlane.xlu1 %296  ;;  %v294_v11 = vpop.xlane.xlu0 %293 }
 0x163   : > { %v463_v16 = vpop.eup %462  ;;  %v449_v17 = vmul.f32 -1.442695, %v297_v10  ;;  %v448_v24 = vmul.f32 -1.442695, %v294_v11 }
 0x164   : > { %v465_v22 = vpop.eup %464  ;;  %v323_v23 = vadd.f32 1.0, %v463_v16 }
 0x165   : > { %v322_v25 = vadd.f32 1.0, %v465_v22  ;;  %474 = vpow2.f32 %v449_v17 }
 0x166   : > { %476 = vrcp.f32 %v323_v23 }
 0x167   : > { %v467_v26 = vpop.eup %466  ;;  %478 = vrcp.f32 %v322_v25 }
 0x168   : > { %v469_v27 = vpop.eup %468  ;;  %v325_v28 = vadd.f32 1.0, %v467_v26  ;;  %480 = vpow2.f32 %v448_v24 }
 0x169   : > { %v324_v29 = vadd.f32 1.0, %v469_v27 }
 0x16a   : > { %482 = vrcp.f32 %v325_v28 }
 0x16b   : > { %v471_v30 = vpop.eup %470  ;;  %484 = vrcp.f32 %v324_v29 }
 0x16c   : > { %v473_v31 = vpop.eup %472  ;;  %v327_v32 = vadd.f32 1.0, %v471_v30 }
 0x16d   : > { %v326_v33 = vadd.f32 1.0, %v473_v31 }
 0x16e   : > { %486 = vrcp.f32 %v327_v32 }
 0x16f   : > { %v475_v34 = vpop.eup %474  ;;  %488 = vrcp.f32 %v326_v33 }
 0x170   : > { %v477_v35 = vpop.eup %476  ;;  %v329_v36 = vadd.f32 1.0, %v475_v34 }
 0x171   : > { %v479_v37 = vpop.eup %478  ;;  %v348_v38 = vmul.f32 %v477_v35, %v548_v5  ;;  %v349_v39 = vmul.f32 %v477_v35, %v550_v6 }
 0x172   : > { %v481_v40 = vpop.eup %480  ;;  %v346_v41 = vmul.f32 %v479_v37, %v538_v0  ;;  %v347_v42 = vmul.f32 %v479_v37, %v540_v1  ;;  %490 = vrcp.f32 %v329_v36 }
 0x173   : > { %364 = vst [vmem:[%s655_s28 + $0x10] sm:$0xff] %v348_v38  ;;  %365 = vst [vmem:[%s655_s28 + $0x18] sm:$0xff] %v349_v39  ;;  %v328_v43 = vadd.f32 1.0, %v481_v40 }
 0x174   : > { %v483_v44 = vpop.eup %482  ;;  %362 = vst [vmem:[%s655_s28] sm:$0xff] %v346_v41  ;;  %363 = vst [vmem:[%s655_s28 + $0x8] sm:$0xff] %v347_v42 }
 0x175   : > { %v485_v45 = vpop.eup %484  ;;  %v352_v5 = vmul.f32 %v483_v44, %v554_v8  ;;  %v353_v6 = vmul.f32 %v483_v44, %v556_v9  ;;  %492 = vrcp.f32 %v328_v43 }
 0x176   : > { %v350_v0 = vmul.f32 %v485_v45, %v542_v2  ;;  %v351_v1 = vmul.f32 %v485_v45, %v546_v4 }
 0x177   : > { %368 = vst [vmem:[%s655_s28 + $0x30] sm:$0xff] %v352_v5  ;;  %369 = vst [vmem:[%s655_s28 + $0x38] sm:$0xff] %v353_v6 }
 0x178   : > { %v487_v46 = vpop.eup %486  ;;  %366 = vst [vmem:[%s655_s28 + $0x20] sm:$0xff] %v350_v0  ;;  %367 = vst [vmem:[%s655_s28 + $0x28] sm:$0xff] %v351_v1 }
 0x179   : > { %v489_v47 = vpop.eup %488  ;;  %v356_v8 = vmul.f32 %v487_v46, %v566_v14  ;;  %v357_v9 = vmul.f32 %v487_v46, %v568_v15 }
 0x17a   : > { %v354_v48 = vmul.f32 %v489_v47, %v562_v12  ;;  %v355_v2 = vmul.f32 %v489_v47, %v564_v13 }
 0x17b   : > { %372 = vst [vmem:[%s655_s28 + $0x50] sm:$0xff] %v356_v8  ;;  %373 = vst [vmem:[%s655_s28 + $0x58] sm:$0xff] %v357_v9 }
 0x17c   : > { %v491_v4 = vpop.eup %490  ;;  %370 = vst [vmem:[%s655_s28 + $0x40] sm:$0xff] %v354_v48  ;;  %371 = vst [vmem:[%s655_s28 + $0x48] sm:$0xff] %v355_v2 }
 0x17d   : > { %v360_v49 = vmul.f32 %v491_v4, %v578_v20  ;;  %v361_v50 = vmul.f32 %v491_v4, %v580_v21 }
 0x17f   : > { %v493_v51 = vpop.eup %492  ;;  %376 = vst [vmem:[%s655_s28 + $0x70] sm:$0xff] %v360_v49  ;;  %377 = vst [vmem:[%s655_s28 + $0x78] sm:$0xff] %v361_v50 }
 0x180   : > { %v358_v14 = vmul.f32 %v493_v51, %v574_v18  ;;  %v359_v15 = vmul.f32 %v493_v51, %v576_v19 }
 0x182   : > { %374 = vst [vmem:[%s655_s28 + $0x60] sm:$0xff] %v358_v14  ;;  %375 = vst [vmem:[%s655_s28 + $0x68] sm:$0xff] %v359_v15 }
 0x183 PF: > { %s13_s12 = sadd.s32 1, %s500_s12  }
 0x184   : > { %p10_p4 = scmp.ge.s32.totalorder %s13_s12, 4  }
 0x186   :  { %12 = sbr.rel (!%p10_p4) target bundleno = 1 (0x1), region = 62 }

</bundles_post_ra>
